<compile_context>
chip_gen: v7x
topology: tpu7x:2x2x1
jax: 0.10.0
libtpu: 0.0.40
codegen_flags: <defaults>
</compile_context>

<pallas_src>
import numpy as np

import jax
import jax.numpy as jnp
from jax import lax
from jax.experimental import pallas as pl
from jax.experimental.pallas import tpu as pltpu


def _make_kernel(H, W, Cin, Cout):
    WCin, WCout = W * Cin, W * Cout

    def kernel(x_ref, wup_ref, w1_ref, b1_ref, w2_ref, b2_ref, s3_ref, b3_ref,
               out_ref, xbuf_ref, mid_ref):
        f32 = jnp.float32

        # -- stage the input with a zero halo row above/below (halo built in
        #    VMEM, no wrapper jnp.pad; only 2 rows zeroed per step, interior is
        #    one aligned full-width store).
        xbuf_ref[0:1, :] = jnp.zeros((1, WCin), f32)
        xbuf_ref[H + 1:H + 2, :] = jnp.zeros((1, WCin), f32)
        xbuf_ref[1:H + 1, :] = x_ref[...]

        # -- upper branch: 1x1 conv; final-BN scale is pre-folded into wup.
        up = jnp.dot(x_ref[...], wup_ref[...], preferred_element_type=f32)

        # -- lower branch, conv1: 3x3 conv as 3 banded matmuls
        #    (H, W*Cin) @ (W*Cin, W*Cout); BN1 scale folded into the weights.
        acc1 = jnp.dot(xbuf_ref[0:H, :], w1_ref[0], preferred_element_type=f32)
        acc1 = acc1 + jnp.dot(xbuf_ref[1:H + 1, :], w1_ref[1],
                              preferred_element_type=f32)
        acc1 = acc1 + jnp.dot(xbuf_ref[2:H + 2, :], w1_ref[2],
                              preferred_element_type=f32)
        y1 = jnp.maximum(acc1 + b1_ref[...], 0.0)

        # -- stage y1 with its zero halo rows for conv2 (interior fully
        #    overwritten every grid step -> no cross-iteration dependence).
        mid_ref[0:1, :] = jnp.zeros((1, WCout), f32)
        mid_ref[H + 1:H + 2, :] = jnp.zeros((1, WCout), f32)
        mid_ref[1:H + 1, :] = y1

        # -- lower branch, conv2: 3x3 banded matmuls; BN2 scale folded.
        acc2 = jnp.dot(mid_ref[0:H, :], w2_ref[0], preferred_element_type=f32)
        acc2 = acc2 + jnp.dot(mid_ref[1:H + 1, :], w2_ref[1],
                              preferred_element_type=f32)
        acc2 = acc2 + jnp.dot(mid_ref[2:H + 2, :], w2_ref[2],
                              preferred_element_type=f32)
        y2 = jnp.maximum(acc2 + b2_ref[...], 0.0)

        # -- residual add + final BN + ReLU (scale already folded into `up`),
        #    stored lane-dense as (H, W*Cout).
        out_ref[...] = jnp.maximum(up + y2 * s3_ref[...] + b3_ref[...], 0.0)

    return kernel


def _banded_3x3(w_hwio, scale, W):
    """Fold BN `scale` into a (3,3,Ci,Co) kernel and build 3 banded matrices
    of shape (W*Ci, W*Co): B[e][p*Ci+i, x*Co+o] = w[e, p-x+1, i, o]*s[o] for
    |p - x| <= 1.  Boundary taps that only hit the zero padding are dropped, so
    no left/right pad columns are needed in the activations."""
    Co = w_hwio.shape[3]
    wf = (w_hwio * scale.reshape(1, 1, 1, Co)).astype(jnp.float32)
    shifts = [np.eye(W, W, k=1, dtype=np.float32),    # dx=0 reads column x-1
              np.eye(W, W, k=0, dtype=np.float32),    # dx=1 reads column x
              np.eye(W, W, k=-1, dtype=np.float32)]   # dx=2 reads column x+1
    rows = []
    for e in range(3):
        b = sum(jnp.kron(jnp.asarray(shifts[d]), wf[e, d]) for d in range(3))
        rows.append(b)
    return jnp.stack(rows)                            # (3, W*Ci, W*Co)


@jax.jit
def residual_block_forward(x_nchw, w_up, w1, s1, b1, w2, s2, b2, s3, b3):
    N, Cin, H, W = x_nchw.shape
    Cout = w_up.shape[1]
    WCin, WCout = W * Cin, W * Cout

    # NCHW -> (N, H, W*Cin) lane-dense rows (boundary layout pass only; no pad).
    x = jnp.transpose(x_nchw, (0, 2, 3, 1)).astype(jnp.float32)
    x = x.reshape(N, H, WCin)

    # Fold BN scales into the weights and build banded matmul operands.
    w1b = _banded_3x3(w1, s1, W)                               # (3, W*Cin,  W*Cout)
    w2b = _banded_3x3(w2, s2, W)                               # (3, W*Cout, W*Cout)
    wupb = jnp.kron(jnp.eye(W, dtype=jnp.float32),
                    (w_up * s3.reshape(1, Cout)).astype(jnp.float32))  # (W*Cin, W*Cout)

    def tile_vec(v):
        return jnp.tile(jnp.reshape(v, (-1,)), W).reshape(1, WCout).astype(jnp.float32)

    b1t, b2t, s3t, b3t = tile_vec(b1), tile_vec(b2), tile_vec(s3), tile_vec(b3)

    kernel = _make_kernel(H, W, Cin, Cout)

    out = pl.pallas_call(
        kernel,
        out_shape=jax.ShapeDtypeStruct((N, H, WCout), jnp.float32),
        grid_spec=pltpu.PrefetchScalarGridSpec(
            num_scalar_prefetch=0,
            grid=(N,),
            in_specs=[
                pl.BlockSpec((None, H, WCin), lambda n: (n, 0, 0)),
                pl.BlockSpec((WCin, WCout), lambda n: (0, 0)),
                pl.BlockSpec((3, WCin, WCout), lambda n: (0, 0, 0)),
                pl.BlockSpec((1, WCout), lambda n: (0, 0)),
                pl.BlockSpec((3, WCout, WCout), lambda n: (0, 0, 0)),
                pl.BlockSpec((1, WCout), lambda n: (0, 0)),
                pl.BlockSpec((1, WCout), lambda n: (0, 0)),
                pl.BlockSpec((1, WCout), lambda n: (0, 0)),
            ],
            out_specs=pl.BlockSpec((None, H, WCout), lambda n: (n, 0, 0)),
            scratch_shapes=[
                pltpu.VMEM((H + 2, WCin), jnp.float32),    # input + row halo
                pltpu.VMEM((H + 2, WCout), jnp.float32),   # conv1 output + row halo
            ],
        ),
        compiler_params=pltpu.CompilerParams(
            dimension_semantics=("parallel",)),
    )(x, wupb, w1b, b1t, w2b, b2t, s3t, b3t)

    # (N, H, W*Cout) -> NCHW (reshape is free; transpose is the boundary pass).
    return jnp.transpose(out.reshape(N, H, W, Cout), (0, 3, 1, 2))


def _ref_forward(x_nchw, w_up, w1, s1, b1, w2, s2, b2, s3, b3):
    """Pure-JAX reference (default precision, matching the kernel's MXU path)."""
    Cin, Cout = w_up.shape
    dn = ('NHWC', 'HWIO', 'NHWC')
    x = jnp.transpose(x_nchw, (0, 2, 3, 1)).astype(jnp.float32)
    up = lax.conv_general_dilated(x, w_up.reshape(1, 1, Cin, Cout), (1, 1),
                                  'SAME', dimension_numbers=dn)
    c1 = lax.conv_general_dilated(x, w1, (1, 1), 'SAME', dimension_numbers=dn)
    y1 = jnp.maximum(c1 * s1 + b1, 0.0)
    c2 = lax.conv_general_dilated(y1, w2, (1, 1), 'SAME', dimension_numbers=dn)
    y2 = jnp.maximum(c2 * s2 + b2, 0.0)
    out = jnp.maximum((up + y2) * s3 + b3, 0.0)
    return jnp.transpose(out, (0, 3, 1, 2))


def _bn_fold(kg, kb, km, kv, C):
    """Deterministic BatchNorm params folded to (scale, shift), eval mode."""
    gamma = 1.0 + 0.1 * jax.random.normal(kg, (C,), jnp.float32)
    beta = 0.1 * jax.random.normal(kb, (C,), jnp.float32)
    mean = 0.1 * jax.random.normal(km, (C,), jnp.float32)
    var = jnp.abs(jax.random.normal(kv, (C,), jnp.float32)) + 0.5
    eps = 1e-5
    scale = gamma / jnp.sqrt(var + eps)
    shift = beta - mean * scale
    return scale, shift


if __name__ == "__main__":
    N, Cin, Cout, H, W = 2, 4, 8, 16, 16

    key = jax.random.PRNGKey(0)
    ks = jax.random.split(key, 16)

    x = jax.random.normal(ks[0], (N, Cin, H, W), jnp.float32)

    w_up = 0.2 * jax.random.normal(ks[1], (Cin, Cout), jnp.float32)
    w1 = 0.2 * jax.random.normal(ks[2], (3, 3, Cin, Cout), jnp.float32)
    w2 = 0.2 * jax.random.normal(ks[3], (3, 3, Cout, Cout), jnp.float32)

    s1, b1 = _bn_fold(ks[4], ks[5], ks[6], ks[7], Cout)
    s2, b2 = _bn_fold(ks[8], ks[9], ks[10], ks[11], Cout)
    s3, b3 = _bn_fold(ks[12], ks[13], ks[14], ks[15], Cout)

    out = residual_block_forward(x, w_up, w1, s1, b1, w2, s2, b2, s3, b3)
    out = jax.block_until_ready(out)

    ref = _ref_forward(x, w_up, w1, s1, b1, w2, s2, b2, s3, b3)
    ref = jax.block_until_ready(ref)

    assert out.shape == (N, Cout, H, W), out.shape
    # Both kernel and reference run default-precision (bf16-pass) matmuls; the
    # only remaining difference is the BN-scale fold into the weights, so a
    # few-percent tolerance is sufficient and meaningful.
    if not jnp.allclose(out, ref, atol=3e-2, rtol=3e-2):
        raise AssertionError("Pallas kernel output does not match JAX reference")

    print("KERNEL_OK")
</pallas_src>

<mosaic_0001>
module attributes {stable_mosaic.version = 11 : i64} {
  func.func @kernel(%arg0: i32, %arg1: memref<1x16x64xf32, #tpu.memory_space<vmem>>, %arg2: memref<64x128xf32, #tpu.memory_space<vmem>>, %arg3: memref<3x64x128xf32, #tpu.memory_space<vmem>>, %arg4: memref<1x128xf32, #tpu.memory_space<vmem>>, %arg5: memref<3x128x128xf32, #tpu.memory_space<vmem>>, %arg6: memref<1x128xf32, #tpu.memory_space<vmem>>, %arg7: memref<1x128xf32, #tpu.memory_space<vmem>>, %arg8: memref<1x128xf32, #tpu.memory_space<vmem>>, %arg9: memref<1x16x128xf32, #tpu.memory_space<vmem>>, %arg10: memref<18x64xf32, #tpu.memory_space<vmem>>, %arg11: memref<18x128xf32, #tpu.memory_space<vmem>>) attributes {dimension_semantics = [#tpu.dimension_semantics<parallel>], iteration_bounds = array<i64: 2>, scalar_prefetch = 0 : i64, scratch_operands = 2 : i64, tpu.core_type = #tpu.core_type<tc>, window_params = [{transform_indices = @transform_0, window_bounds = array<i64: 1, 16, 64>}, {pipeline_mode = #tpu.pipeline_mode<synchronous>, transform_indices = @transform_1, window_bounds = array<i64: 64, 128>}, {pipeline_mode = #tpu.pipeline_mode<synchronous>, transform_indices = @transform_2, window_bounds = array<i64: 3, 64, 128>}, {pipeline_mode = #tpu.pipeline_mode<synchronous>, transform_indices = @transform_3, window_bounds = array<i64: 1, 128>}, {pipeline_mode = #tpu.pipeline_mode<synchronous>, transform_indices = @transform_4, window_bounds = array<i64: 3, 128, 128>}, {pipeline_mode = #tpu.pipeline_mode<synchronous>, transform_indices = @transform_5, window_bounds = array<i64: 1, 128>}, {pipeline_mode = #tpu.pipeline_mode<synchronous>, transform_indices = @transform_6, window_bounds = array<i64: 1, 128>}, {pipeline_mode = #tpu.pipeline_mode<synchronous>, transform_indices = @transform_7, window_bounds = array<i64: 1, 128>}, {transform_indices = @transform_8, window_bounds = array<i64: 1, 16, 128>}]} {
    %cst = arith.constant 0.000000e+00 : f32
    %0 = vector.broadcast %cst : f32 to vector<1x64xf32>
    %c0 = arith.constant 0 : index
    %c0_0 = arith.constant 0 : index
    %1 = vector.load %arg10[%c0, %c0_0] : memref<18x64xf32, #tpu.memory_space<vmem>>, vector<1x64xf32>
    tpu.vector_store %arg10[%c0, %c0_0], %0 {strides = array<i32>} : memref<18x64xf32, #tpu.memory_space<vmem>>, vector<1x64xf32>,
    %cst_1 = arith.constant 0.000000e+00 : f32
    %2 = vector.broadcast %cst_1 : f32 to vector<1x64xf32>
    %c17 = arith.constant 17 : index
    %c0_2 = arith.constant 0 : index
    %3 = vector.load %arg10[%c17, %c0_2] : memref<18x64xf32, #tpu.memory_space<vmem>>, vector<1x64xf32>
    tpu.vector_store %arg10[%c17, %c0_2], %2 {strides = array<i32>} : memref<18x64xf32, #tpu.memory_space<vmem>>, vector<1x64xf32>,
    %c0_3 = arith.constant 0 : index
    %c0_4 = arith.constant 0 : index
    %c0_5 = arith.constant 0 : index
    %4 = vector.load %arg1[%c0_3, %c0_4, %c0_5] : memref<1x16x64xf32, #tpu.memory_space<vmem>>, vector<1x16x64xf32>
    %5 = vector.shape_cast %4 : vector<1x16x64xf32> to vector<16x64xf32>
    %c1 = arith.constant 1 : index
    %c0_6 = arith.constant 0 : index
    %6 = vector.load %arg10[%c1, %c0_6] : memref<18x64xf32, #tpu.memory_space<vmem>>, vector<16x64xf32>
    tpu.vector_store %arg10[%c1, %c0_6], %5 {strides = array<i32>} : memref<18x64xf32, #tpu.memory_space<vmem>>, vector<16x64xf32>,
    %c0_7 = arith.constant 0 : index
    %c0_8 = arith.constant 0 : index
    %c0_9 = arith.constant 0 : index
    %7 = vector.load %arg1[%c0_7, %c0_8, %c0_9] : memref<1x16x64xf32, #tpu.memory_space<vmem>>, vector<1x16x64xf32>
    %8 = vector.shape_cast %7 : vector<1x16x64xf32> to vector<16x64xf32>
    %c0_10 = arith.constant 0 : index
    %c0_11 = arith.constant 0 : index
    %9 = vector.load %arg2[%c0_10, %c0_11] : memref<64x128xf32, #tpu.memory_space<vmem>>, vector<64x128xf32>
    %cst_12 = arith.constant dense<0.000000e+00> : vector<16x128xf32>
    %10 = tpu.matmul %8, %9, %cst_12 {dimension_numbers = #tpu.dot_dimension_numbers<[1], [0], [0], [1], [0, 0, 1, 1], [], []>} : vector<16x64xf32>, vector<64x128xf32>, vector<16x128xf32> -> vector<16x128xf32>
    %c0_13 = arith.constant 0 : index
    %c0_14 = arith.constant 0 : index
    %11 = vector.load %arg10[%c0_13, %c0_14] : memref<18x64xf32, #tpu.memory_space<vmem>>, vector<16x64xf32>
    %c0_15 = arith.constant 0 : index
    %c0_16 = arith.constant 0 : index
    %c0_17 = arith.constant 0 : index
    %12 = vector.load %arg3[%c0_15, %c0_16, %c0_17] : memref<3x64x128xf32, #tpu.memory_space<vmem>>, vector<1x64x128xf32>
    %13 = vector.shape_cast %12 : vector<1x64x128xf32> to vector<64x128xf32>
    %cst_18 = arith.constant dense<0.000000e+00> : vector<16x128xf32>
    %14 = tpu.matmul %11, %13, %cst_18 {dimension_numbers = #tpu.dot_dimension_numbers<[1], [0], [0], [1], [0, 0, 1, 1], [], []>} : vector<16x64xf32>, vector<64x128xf32>, vector<16x128xf32> -> vector<16x128xf32>
    %c1_19 = arith.constant 1 : index
    %c0_20 = arith.constant 0 : index
    %15 = vector.load %arg10[%c1_19, %c0_20] : memref<18x64xf32, #tpu.memory_space<vmem>>, vector<16x64xf32>
    %c1_21 = arith.constant 1 : index
    %c0_22 = arith.constant 0 : index
    %c0_23 = arith.constant 0 : index
    %16 = vector.load %arg3[%c1_21, %c0_22, %c0_23] : memref<3x64x128xf32, #tpu.memory_space<vmem>>, vector<1x64x128xf32>
    %17 = vector.shape_cast %16 : vector<1x64x128xf32> to vector<64x128xf32>
    %cst_24 = arith.constant dense<0.000000e+00> : vector<16x128xf32>
    %18 = tpu.matmul %15, %17, %cst_24 {dimension_numbers = #tpu.dot_dimension_numbers<[1], [0], [0], [1], [0, 0, 1, 1], [], []>} : vector<16x64xf32>, vector<64x128xf32>, vector<16x128xf32> -> vector<16x128xf32>
    %19 = arith.addf %14, %18 : vector<16x128xf32>
    %c2 = arith.constant 2 : index
    %c0_25 = arith.constant 0 : index
    %20 = vector.load %arg10[%c2, %c0_25] : memref<18x64xf32, #tpu.memory_space<vmem>>, vector<16x64xf32>
    %c2_26 = arith.constant 2 : index
    %c0_27 = arith.constant 0 : index
    %c0_28 = arith.constant 0 : index
    %21 = vector.load %arg3[%c2_26, %c0_27, %c0_28] : memref<3x64x128xf32, #tpu.memory_space<vmem>>, vector<1x64x128xf32>
    %22 = vector.shape_cast %21 : vector<1x64x128xf32> to vector<64x128xf32>
    %cst_29 = arith.constant dense<0.000000e+00> : vector<16x128xf32>
    %23 = tpu.matmul %20, %22, %cst_29 {dimension_numbers = #tpu.dot_dimension_numbers<[1], [0], [0], [1], [0, 0, 1, 1], [], []>} : vector<16x64xf32>, vector<64x128xf32>, vector<16x128xf32> -> vector<16x128xf32>
    %24 = arith.addf %19, %23 : vector<16x128xf32>
    %c0_30 = arith.constant 0 : index
    %c0_31 = arith.constant 0 : index
    %25 = vector.load %arg4[%c0_30, %c0_31] : memref<1x128xf32, #tpu.memory_space<vmem>>, vector<1x128xf32>
    %26 = vector.broadcast %25 : vector<1x128xf32> to vector<16x128xf32>
    %27 = arith.addf %24, %26 : vector<16x128xf32>
    %cst_32 = arith.constant 0.000000e+00 : f32
    %28 = vector.broadcast %cst_32 : f32 to vector<16x128xf32>
    %29 = arith.maximumf %27, %28 : vector<16x128xf32>
    %cst_33 = arith.constant 0.000000e+00 : f32
    %30 = vector.broadcast %cst_33 : f32 to vector<1x128xf32>
    %c0_34 = arith.constant 0 : index
    %c0_35 = arith.constant 0 : index
    %31 = vector.load %arg11[%c0_34, %c0_35] : memref<18x128xf32, #tpu.memory_space<vmem>>, vector<1x128xf32>
    tpu.vector_store %arg11[%c0_34, %c0_35], %30 {strides = array<i32>} : memref<18x128xf32, #tpu.memory_space<vmem>>, vector<1x128xf32>,
    %cst_36 = arith.constant 0.000000e+00 : f32
    %32 = vector.broadcast %cst_36 : f32 to vector<1x128xf32>
    %c17_37 = arith.constant 17 : index
    %c0_38 = arith.constant 0 : index
    %33 = vector.load %arg11[%c17_37, %c0_38] : memref<18x128xf32, #tpu.memory_space<vmem>>, vector<1x128xf32>
    tpu.vector_store %arg11[%c17_37, %c0_38], %32 {strides = array<i32>} : memref<18x128xf32, #tpu.memory_space<vmem>>, vector<1x128xf32>,
    %c1_39 = arith.constant 1 : index
    %c0_40 = arith.constant 0 : index
    %34 = vector.load %arg11[%c1_39, %c0_40] : memref<18x128xf32, #tpu.memory_space<vmem>>, vector<16x128xf32>
    tpu.vector_store %arg11[%c1_39, %c0_40], %29 {strides = array<i32>} : memref<18x128xf32, #tpu.memory_space<vmem>>, vector<16x128xf32>,
    %c0_41 = arith.constant 0 : index
    %c0_42 = arith.constant 0 : index
    %35 = vector.load %arg11[%c0_41, %c0_42] : memref<18x128xf32, #tpu.memory_space<vmem>>, vector<16x128xf32>
    %c0_43 = arith.constant 0 : index
    %c0_44 = arith.constant 0 : index
    %c0_45 = arith.constant 0 : index
    %36 = vector.load %arg5[%c0_43, %c0_44, %c0_45] : memref<3x128x128xf32, #tpu.memory_space<vmem>>, vector<1x128x128xf32>
    %37 = vector.shape_cast %36 : vector<1x128x128xf32> to vector<128x128xf32>
    %cst_46 = arith.constant dense<0.000000e+00> : vector<16x128xf32>
    %38 = tpu.matmul %35, %37, %cst_46 {dimension_numbers = #tpu.dot_dimension_numbers<[1], [0], [0], [1], [0, 0, 1, 1], [], []>} : vector<16x128xf32>, vector<128x128xf32>, vector<16x128xf32> -> vector<16x128xf32>
    %c1_47 = arith.constant 1 : index
    %c0_48 = arith.constant 0 : index
    %39 = vector.load %arg11[%c1_47, %c0_48] : memref<18x128xf32, #tpu.memory_space<vmem>>, vector<16x128xf32>
    %c1_49 = arith.constant 1 : index
    %c0_50 = arith.constant 0 : index
    %c0_51 = arith.constant 0 : index
    %40 = vector.load %arg5[%c1_49, %c0_50, %c0_51] : memref<3x128x128xf32, #tpu.memory_space<vmem>>, vector<1x128x128xf32>
    %41 = vector.shape_cast %40 : vector<1x128x128xf32> to vector<128x128xf32>
    %cst_52 = arith.constant dense<0.000000e+00> : vector<16x128xf32>
    %42 = tpu.matmul %39, %41, %cst_52 {dimension_numbers = #tpu.dot_dimension_numbers<[1], [0], [0], [1], [0, 0, 1, 1], [], []>} : vector<16x128xf32>, vector<128x128xf32>, vector<16x128xf32> -> vector<16x128xf32>
    %43 = arith.addf %38, %42 : vector<16x128xf32>
    %c2_53 = arith.constant 2 : index
    %c0_54 = arith.constant 0 : index
    %44 = vector.load %arg11[%c2_53, %c0_54] : memref<18x128xf32, #tpu.memory_space<vmem>>, vector<16x128xf32>
    %c2_55 = arith.constant 2 : index
    %c0_56 = arith.constant 0 : index
    %c0_57 = arith.constant 0 : index
    %45 = vector.load %arg5[%c2_55, %c0_56, %c0_57] : memref<3x128x128xf32, #tpu.memory_space<vmem>>, vector<1x128x128xf32>
    %46 = vector.shape_cast %45 : vector<1x128x128xf32> to vector<128x128xf32>
    %cst_58 = arith.constant dense<0.000000e+00> : vector<16x128xf32>
    %47 = tpu.matmul %44, %46, %cst_58 {dimension_numbers = #tpu.dot_dimension_numbers<[1], [0], [0], [1], [0, 0, 1, 1], [], []>} : vector<16x128xf32>, vector<128x128xf32>, vector<16x128xf32> -> vector<16x128xf32>
    %48 = arith.addf %43, %47 : vector<16x128xf32>
    %c0_59 = arith.constant 0 : index
    %c0_60 = arith.constant 0 : index
    %49 = vector.load %arg6[%c0_59, %c0_60] : memref<1x128xf32, #tpu.memory_space<vmem>>, vector<1x128xf32>
    %50 = vector.broadcast %49 : vector<1x128xf32> to vector<16x128xf32>
    %51 = arith.addf %48, %50 : vector<16x128xf32>
    %cst_61 = arith.constant 0.000000e+00 : f32
    %52 = vector.broadcast %cst_61 : f32 to vector<16x128xf32>
    %53 = arith.maximumf %51, %52 : vector<16x128xf32>
    %c0_62 = arith.constant 0 : index
    %c0_63 = arith.constant 0 : index
    %54 = vector.load %arg7[%c0_62, %c0_63] : memref<1x128xf32, #tpu.memory_space<vmem>>, vector<1x128xf32>
    %55 = vector.broadcast %54 : vector<1x128xf32> to vector<16x128xf32>
    %56 = arith.mulf %53, %55 : vector<16x128xf32>
    %57 = arith.addf %10, %56 : vector<16x128xf32>
    %c0_64 = arith.constant 0 : index
    %c0_65 = arith.constant 0 : index
    %58 = vector.load %arg8[%c0_64, %c0_65] : memref<1x128xf32, #tpu.memory_space<vmem>>, vector<1x128xf32>
    %59 = vector.broadcast %58 : vector<1x128xf32> to vector<16x128xf32>
    %60 = arith.addf %57, %59 : vector<16x128xf32>
    %cst_66 = arith.constant 0.000000e+00 : f32
    %61 = vector.broadcast %cst_66 : f32 to vector<16x128xf32>
    %62 = arith.maximumf %60, %61 : vector<16x128xf32>
    %c0_67 = arith.constant 0 : index
    %c0_68 = arith.constant 0 : index
    %c0_69 = arith.constant 0 : index
    %63 = vector.load %arg9[%c0_67, %c0_68, %c0_69] : memref<1x16x128xf32, #tpu.memory_space<vmem>>, vector<1x16x128xf32>
    %64 = vector.shape_cast %63 : vector<1x16x128xf32> to vector<16x128xf32>
    %65 = vector.shape_cast %62 : vector<16x128xf32> to vector<1x16x128xf32>
    tpu.vector_store %arg9[%c0_67, %c0_68, %c0_69], %65 {strides = array<i32>} : memref<1x16x128xf32, #tpu.memory_space<vmem>>, vector<1x16x128xf32>,
    return
  }
  func.func @transform_0(%arg0: i32) -> (i32, i32, i32) {
    %c0_i32 = arith.constant 0 : i32
    %c0_i32_0 = arith.constant 0 : i32
    %c0_i32_1 = arith.constant 0 : i32
    return %arg0, %c0_i32, %c0_i32_0 : i32, i32, i32
  }
  func.func @transform_1(%arg0: i32) -> (i32, i32) {
    %c0_i32 = arith.constant 0 : i32
    %c0_i32_0 = arith.constant 0 : i32
    %c0_i32_1 = arith.constant 0 : i32
    return %c0_i32, %c0_i32_0 : i32, i32
  }
  func.func @transform_2(%arg0: i32) -> (i32, i32, i32) {
    %c0_i32 = arith.constant 0 : i32
    %c0_i32_0 = arith.constant 0 : i32
    %c0_i32_1 = arith.constant 0 : i32
    %c0_i32_2 = arith.constant 0 : i32
    return %c0_i32, %c0_i32_0, %c0_i32_1 : i32, i32, i32
  }
  func.func @transform_3(%arg0: i32) -> (i32, i32) {
    %c0_i32 = arith.constant 0 : i32
    %c0_i32_0 = arith.constant 0 : i32
    %c0_i32_1 = arith.constant 0 : i32
    return %c0_i32, %c0_i32_0 : i32, i32
  }
  func.func @transform_4(%arg0: i32) -> (i32, i32, i32) {
    %c0_i32 = arith.constant 0 : i32
    %c0_i32_0 = arith.constant 0 : i32
    %c0_i32_1 = arith.constant 0 : i32
    %c0_i32_2 = arith.constant 0 : i32
    return %c0_i32, %c0_i32_0, %c0_i32_1 : i32, i32, i32
  }
  func.func @transform_5(%arg0: i32) -> (i32, i32) {
    %c0_i32 = arith.constant 0 : i32
    %c0_i32_0 = arith.constant 0 : i32
    %c0_i32_1 = arith.constant 0 : i32
    return %c0_i32, %c0_i32_0 : i32, i32
  }
  func.func @transform_6(%arg0: i32) -> (i32, i32) {
    %c0_i32 = arith.constant 0 : i32
    %c0_i32_0 = arith.constant 0 : i32
    %c0_i32_1 = arith.constant 0 : i32
    return %c0_i32, %c0_i32_0 : i32, i32
  }
  func.func @transform_7(%arg0: i32) -> (i32, i32) {
    %c0_i32 = arith.constant 0 : i32
    %c0_i32_0 = arith.constant 0 : i32
    %c0_i32_1 = arith.constant 0 : i32
    return %c0_i32, %c0_i32_0 : i32, i32
  }
  func.func @transform_8(%arg0: i32) -> (i32, i32, i32) {
    %c0_i32 = arith.constant 0 : i32
    %c0_i32_0 = arith.constant 0 : i32
    %c0_i32_1 = arith.constant 0 : i32
    return %arg0, %c0_i32, %c0_i32_0 : i32, i32, i32
  }
}

</mosaic_0001>

<bundles_post_ra>
// kernel: tile.23
= control target key start
LH: loop header
LB: loop body
LE: loop exit
PB: predicated region body
PF: predicated region fallthrough
CT: control target
= control target key end

     0   :  { %s28_s0 = inlined_call_operand.vmem [shape: f32[8], index: 0, kind: input, shape index: {}]   ;;  %s29_s1 = inlined_call_operand.vmem [shape: f32[16,8], index: 1, kind: output, shape index: {}]  }
   0x1   :  { %v4_v0 = vld [vmem:[%s28_s0] ss:$0 sm:$0xff] }
   0x2   :  { %5 = vst [vmem:[%s29_s1] sm:$0xff] %v4_v0  ;;  %8 = vst [vmem:[%s29_s1 + $0x8] sm:$0xff] %v4_v0 }

// kernel: tile.24
= control target key start
LH: loop header
LB: loop body
LE: loop exit
PB: predicated region body
PF: predicated region fallthrough
CT: control target
= control target key end

     0   :  { %s131_s10 = smov 120   ;;  %s132_s11 = smov 104   ;;  %vm3_vm0 = vcmask 64512   ;;  %vm9_vm1 = vcmask 1048512   ;;  %vm15_vm2 = vcmask 982912   ;;  %vm21_vm3 = vcmask 917312   ;;  %s207_s0 = inlined_call_operand.vmem [shape: f32[16,8], index: 0, kind: input, shape index: {}]   ;;  %s208_s1 = inlined_call_operand.vmem [shape: f32[1,128], index: 1, kind: output, shape index: {}]  }
   0x1   :  { %v101_v0 = vld [vmem:[%s207_s0 + $0xf] sm:$0x1]   ;;  %v103_v1 = vld [vmem:[%s207_s0 + $0xd] sm:$0x1]   ;;  %v102_v2 = vld [vmem:[%s207_s0 + $0xe] sm:$0x1]  }
   0x2   :  { %7 = vrot.lane.b32.xlu0 %v101_v0, %s131_s10  ;;  %19 = vrot.lane.b32.xlu1 %v103_v1, %s132_s11  ;;  %v104_v3 = vld [vmem:[%s207_s0 + $0xc] sm:$0x1]   ;;  %s133_s16 = smov 112   ;;  %s134_s17 = smov 96   ;;  %v105_v4 = vld [vmem:[%s207_s0 + $0xb] sm:$0x1]  }
   0x3   :  { %v106_v5 = vld [vmem:[%s207_s0 + $0xa] sm:$0x1]   ;;  %v2_v6 = vld [vmem:[%s207_s0] sm:$0x1]   ;;  %s135_s24 = smov 88   ;;  %s136_s25 = smov 80  }
   0x4   :  { %4 = vst.msk [vmem:[#allocation0] sm:$0x1] %vm3_vm0, %v2_v6   ;;  %v107_v7 = vld [vmem:[%s207_s0 + $0x9] sm:$0x1]   ;;  %v108_v8 = vld [vmem:[%s207_s0 + $0x8] sm:$0x1]  }
   0x5   :  { %s137_s30 = smov 72   ;;  %s138_s2 = smov 64   ;;  %v109_v9 = vld [vmem:[%s207_s0 + $0x7] sm:$0x1]   ;;  %v110_v10 = vld [vmem:[%s207_s0 + $0x6] sm:$0x1]  }
   0x6   :  { %13 = vrot.lane.b32.xlu0 %v102_v2, %s133_s16  ;;  %25 = vrot.lane.b32.xlu1 %v104_v3, %s134_s17  ;;  %s139_s7 = smov 56   ;;  %s140_s8 = smov 48   ;;  %v111_v11 = vld [vmem:[%s207_s0 + $0x5] sm:$0x1]   ;;  %v112_v12 = vld [vmem:[%s207_s0 + $0x4] sm:$0x1]  }
   0x7   :  { %s141_s13 = smov 40   ;;  %s142_s14 = smov 32   ;;  %v113_v13 = vld [vmem:[%s207_s0 + $0x3] sm:$0x1]   ;;  %v114_v14 = vld [vmem:[%s207_s0 + $0x2] sm:$0x1]  }
   0x8   :  { %s143_s19 = smov 24   ;;  %s144_s20 = smov 16   ;;  %v115_v15 = vld [vmem:[%s207_s0 + $0x1] sm:$0x1]   ;;  %vm27_vm4 = vcmask 851712   ;;  %vm33_vm5 = vcmask 786112  }
   0x9   :  { %s145_s0 = smov 8   ;;  %vm39_vm6 = vcmask 720512   ;;  %vm45_vm7 = vcmask 654912   ;;  %vm51_vm8 = vcmask 589312   ;;  %vm57_vm9 = vcmask 523712  }
   0xa   :  { %31 = vrot.lane.b32.xlu0 %v105_v4, %s135_s24  ;;  %37 = vrot.lane.b32.xlu1 %v106_v5, %s136_s25  ;;  %vm63_vm10 = vcmask 458112   ;;  %vm69_vm11 = vcmask 392512   ;;  %vm75_vm12 = vcmask 326912   ;;  %vm81_vm13 = vcmask 261312  }
   0xb   :  { %vm87_vm14 = vcmask 195712   ;;  %vm93_vm15 = vcmask 130112  }
   0xe   :  { %43 = vrot.lane.b32.xlu0 %v107_v7, %s137_s30  ;;  %49 = vrot.lane.b32.xlu1 %v108_v8, %s138_s2 }
  0x12   :  { %55 = vrot.lane.b32.xlu0 %v109_v9, %s139_s7  ;;  %61 = vrot.lane.b32.xlu1 %v110_v10, %s140_s8 }
  0x16   :  { %67 = vrot.lane.b32.xlu0 %v111_v11, %s141_s13  ;;  %73 = vrot.lane.b32.xlu1 %v112_v12, %s142_s14 }
  0x1a   :  { %79 = vrot.lane.b32.xlu0 %v113_v13, %s143_s19  ;;  %85 = vrot.lane.b32.xlu1 %v114_v14, %s144_s20 }
  0x1e   :  { %91 = vrot.lane.b32.xlu0 %v115_v15, %s145_s0 }
  0x74   :  { %v8_v16 = vpop.permute.xlu0 %7   ;;  %v20_v17 = vpop.permute.xlu1 %19  }
  0x75   :  { %10 = vst.msk [vmem:[#allocation0] sm:$0x1] %vm9_vm1, %v8_v16  }
  0x78   :  { %v14_v18 = vpop.permute.xlu0 %13   ;;  %v26_v19 = vpop.permute.xlu1 %25  }
  0x79   :  { %16 = vst.msk [vmem:[#allocation0] sm:$0x1] %vm15_vm2, %v14_v18  }
  0x7a   :  { %22 = vst.msk [vmem:[#allocation0] sm:$0x1] %vm21_vm3, %v20_v17  }
  0x7b   :  { %28 = vst.msk [vmem:[#allocation0] sm:$0x1] %vm27_vm4, %v26_v19  }
  0x7c   :  { %v32_v20 = vpop.permute.xlu0 %31   ;;  %v38_v21 = vpop.permute.xlu1 %37  }
  0x7d   :  { %34 = vst.msk [vmem:[#allocation0] sm:$0x1] %vm33_vm5, %v32_v20  }
  0x7e   :  { %40 = vst.msk [vmem:[#allocation0] sm:$0x1] %vm39_vm6, %v38_v21  }
  0x80   :  { %v44_v22 = vpop.permute.xlu0 %43   ;;  %v50_v23 = vpop.permute.xlu1 %49  }
  0x81   :  { %46 = vst.msk [vmem:[#allocation0] sm:$0x1] %vm45_vm7, %v44_v22  }
  0x82   :  { %52 = vst.msk [vmem:[#allocation0] sm:$0x1] %vm51_vm8, %v50_v23  }
  0x84   :  { %v56_v24 = vpop.permute.xlu0 %55   ;;  %v62_v25 = vpop.permute.xlu1 %61  }
  0x85   :  { %58 = vst.msk [vmem:[#allocation0] sm:$0x1] %vm57_vm9, %v56_v24  }
  0x86   :  { %64 = vst.msk [vmem:[#allocation0] sm:$0x1] %vm63_vm10, %v62_v25  }
  0x88   :  { %v68_v26 = vpop.permute.xlu0 %67   ;;  %v74_v27 = vpop.permute.xlu1 %73  }
  0x89   :  { %70 = vst.msk [vmem:[#allocation0] sm:$0x1] %vm69_vm11, %v68_v26  }
  0x8a   :  { %76 = vst.msk [vmem:[#allocation0] sm:$0x1] %vm75_vm12, %v74_v27  }
  0x8c   :  { %v80_v28 = vpop.permute.xlu0 %79   ;;  %v86_v29 = vpop.permute.xlu1 %85  }
  0x8d   :  { %82 = vst.msk [vmem:[#allocation0] sm:$0x1] %vm81_vm13, %v80_v28  }
  0x8e   :  { %88 = vst.msk [vmem:[#allocation0] sm:$0x1] %vm87_vm14, %v86_v29  }
  0x90   :  { %v92_v30 = vpop.permute.xlu0 %91  }
  0x91   :  { %94 = vst.msk [vmem:[#allocation0] sm:$0x1] %vm93_vm15, %v92_v30  }
  0x98   :  { %v98_v31 = vld [vmem:[#allocation0] sm:$0x1] }
  0x99   :  { %100 = vst [vmem:[%s208_s1] sm:$0x1] %v98_v31 }

// kernel: residual_block_forward.1
= control target key start
LH: loop header
LB: loop body
LE: loop exit
PB: predicated region body
PF: predicated region fallthrough
CT: control target
= control target key end

     0   :  { %s1647_s27 = smov 0   ;;  %s1941_s0 = inlined_call_operand.vmem [shape: f32[2,16,64], index: 0, kind: input, shape index: {}]   ;;  %s1942_s1 = inlined_call_operand.vmem [shape: f32[64,128], index: 1, kind: input, shape index: {}]   ;;  %s1943_s2 = inlined_call_operand.vmem [shape: f32[3,64,128], index: 2, kind: input, shape index: {}]   ;;  %s1944_s3 = inlined_call_operand.vmem [shape: f32[1,128], index: 3, kind: input, shape index: {}]   ;;  %s1945_s4 = inlined_call_operand.vmem [shape: f32[3,128,128], index: 4, kind: input, shape index: {}]   ;;  %s1946_s5 = inlined_call_operand.vmem [shape: f32[1,128], index: 5, kind: input, shape index: {}]   ;;  %s1947_s6 = inlined_call_operand.vmem [shape: f32[1,128], index: 6, kind: input, shape index: {}]   ;;  %s1948_s7 = inlined_call_operand.vmem [shape: f32[1,128], index: 7, kind: input, shape index: {}]   ;;  %s1949_s8 = inlined_call_operand.vmem [shape: f32[2,16,128], index: 8, kind: output, shape index: {}]  }
   0x1 LB: > { %s1068_s28 = sadd.s32 4294967295, %s1599_s27   ;;  %p1072_p0 = scmp.ge.s32.totalorder %s1599_s27, 1  ;;  %s1599_s27 = sphi %s1647_s27, %s18_s27  }
   0x2   : > { %p262_p1 = scmp.lt.s32.totalorder %s1599_s27, 3 }
   0x4   : > { %p263_p2 = pnand %p1072_p0, %p262_p1 }
   0x5   : > { %v1077_v0 = vld [vmem:[%s1943_s2 + $0x40] sm:$0xff] (!%p263_p2)  ;;  %v1078_v1 = vld [vmem:[%s1943_s2 + $0x48] sm:$0xff] (!%p263_p2)  ;;  %v1079_v2 = vld [vmem:[%s1943_s2 + $0x50] sm:$0xff] (!%p263_p2)  ;;  %p296_p3 = scmp.lt.s32.totalorder (!%p263_p2), %s1068_s28, 1  ;;  %vm306_vm0 = vcmask (!%p263_p2), 516096   ;;  %v1601_v8 = vmov (!%p263_p2), 0.0  }
   0x6   : > { %266 = sbr.rel (%p263_p2) target bundleno = 566 (0x236), region = 52  ;;  %v1416_v3 = vpack.c.bf16 (!%p263_p2), %v1078_v1, %v1077_v0  ;;  %v1080_v4 = vld [vmem:[%s1943_s2 + $0x58] sm:$0xff] (!%p263_p2)  ;;  %v1081_v6 = vld [vmem:[%s1943_s2 + $0x60] sm:$0xff] (!%p263_p2)  ;;  %v1082_v7 = vld [vmem:[%s1943_s2 + $0x68] sm:$0xff] (!%p263_p2)  ;;  %307 = vst.msk [vmem:[#allocation2] sm:$0x1] (!%p263_p2), %vm306_vm0, %v1601_v8 }
   0x7   : > { %v1420_v5 = vpack.c.bf16 (!%p263_p2), %v1080_v4, %v1079_v2  ;;  %308 = vst.msk [vmem:[#allocation2 + $0x11] sm:$0x1] (!%p263_p2), %vm306_vm0, %v1601_v8  ;;  %612 = vst [vmem:[#allocation3] sm:$0x1] (!%p263_p2), %v1601_v8  ;;  %vm311_vm1 = vcmask (!%p263_p2), 523264   ;;  %v1424_v9 = vpack.c.bf16 (!%p263_p2), %v1082_v7, %v1081_v6  ;;  %v1083_v10 = vld [vmem:[%s1943_s2 + $0x70] sm:$0xff] (!%p263_p2) }
   0x8   : > { %613 = vst [vmem:[#allocation3 + $0x11] sm:$0x1] (!%p263_p2), %v1601_v8  ;;  %1417 = vmatprep.subr.bf16.mxu0 (!%p263_p2), %v1416_v3  ;;  %v1084_v11 = vld [vmem:[%s1943_s2 + $0x78] sm:$0xff] (!%p263_p2)  ;;  %v1100_v14 = vld [vmem:[%s1945_s4 + $0x80] sm:$0xff] (!%p263_p2)  ;;  %v1101_v16 = vld [vmem:[%s1945_s4 + $0x88] sm:$0xff] (!%p263_p2) }
   0x9   : > { %1419 = vmatpush3.bf16.msra.mxu0 (!%p263_p2), %v1416_v3  ;;  %v1428_v15 = vpack.c.bf16 (!%p263_p2), %v1084_v11, %v1083_v10  ;;  %v1102_v17 = vld [vmem:[%s1945_s4 + $0x90] sm:$0xff] (!%p263_p2)  ;;  %v1103_v18 = vld [vmem:[%s1945_s4 + $0x98] sm:$0xff] (!%p263_p2)  ;;  %v326_v19 = vld [vmem:[%s1943_s2] sm:$0xff] (!%p263_p2)  ;;  %v1464_v21 = vpack.c.bf16 (!%p263_p2), %v1101_v16, %v1100_v14 }
   0xa   : > { %1421 = vmatprep.subr.bf16.mxu0 (!%p263_p2), %v1420_v5  ;;  %v327_v20 = vld [vmem:[%s1943_s2 + $0x8] sm:$0xff] (!%p263_p2)  ;;  %v1468_v22 = vpack.c.bf16 (!%p263_p2), %v1103_v18, %v1102_v17  ;;  %v1104_v23 = vld [vmem:[%s1945_s4 + $0xa0] sm:$0xff] (!%p263_p2)  ;;  %v328_v27 = vld [vmem:[%s1943_s2 + $0x10] sm:$0xff] (!%p263_p2) }
   0xb   : > { %v1105_v24 = vld [vmem:[%s1945_s4 + $0xa8] sm:$0xff] (!%p263_p2)  ;;  %1465 = vmatprep.subr.bf16.mxu1 (!%p263_p2), %v1464_v21  ;;  %v1432_v25 = vpack.c.bf16 (!%p263_p2), %v327_v20, %v326_v19  ;;  %v329_v28 = vld [vmem:[%s1943_s2 + $0x18] sm:$0xff] (!%p263_p2)  ;;  %v1106_v30 = vld [vmem:[%s1945_s4 + $0xb0] sm:$0xff] (!%p263_p2) }
   0xc   : > { %1467 = vmatpush3.bf16.msra.mxu1 (!%p263_p2), %v1464_v21  ;;  %v1472_v29 = vpack.c.bf16 (!%p263_p2), %v1105_v24, %v1104_v23  ;;  %v1107_v31 = vld [vmem:[%s1945_s4 + $0xb8] sm:$0xff] (!%p263_p2)  ;;  %v1436_v33 = vpack.c.bf16 (!%p263_p2), %v329_v28, %v328_v27  ;;  %v330_v35 = vld [vmem:[%s1943_s2 + $0x20] sm:$0xff] (!%p263_p2)  ;;  %v331_v36 = vld [vmem:[%s1943_s2 + $0x28] sm:$0xff] (!%p263_p2) }
   0xd   : > { %s1951_s28 = smov (!%p296_p3, %s1068_s28), 1  ;;  %1423 = vmatpush3.bf16.msra.mxu0 %v1420_v5  ;;  %1469 = vmatprep.subr.bf16.mxu1 %v1468_v22  ;;  %v1476_v37 = vpack.c.bf16 %v1107_v31, %v1106_v30  ;;  %v1108_v38 = vld [vmem:[%s1945_s4 + $0xc0] sm:$0xff]  ;;  %v1109_v39 = vld [vmem:[%s1945_s4 + $0xc8] sm:$0xff]  ;;  %v1440_v40 = vpack.c.bf16 %v331_v36, %v330_v35  ;;  %v332_v41 = vld [vmem:[%s1943_s2 + $0x30] sm:$0xff] }
   0xe   : > { %s1139_s19 = sshll.u32 %s1951_s28, 4  ;;  %1425 = vmatprep.subr.bf16.mxu0 %v1424_v9  ;;  %v333_v42 = vld [vmem:[%s1943_s2 + $0x38] sm:$0xff]  ;;  %v1480_v43 = vpack.c.bf16 %v1109_v39, %v1108_v38  ;;  %v1089_v45 = vld [vmem:[%s1943_s2 + $0x80] sm:$0xff]  ;;  %v1090_v46 = vld [vmem:[%s1943_s2 + $0x88] sm:$0xff] }
   0xf   : > { %s300_s24 = scalar_lea.vmem %s1941_s0, %s1139_s19  ;;  %v1444_v44 = vpack.c.bf16 %v333_v42, %v332_v41  ;;  %v1448_v47 = vpack.c.bf16 %v1090_v46, %v1089_v45  ;;  %v1091_v48 = vld [vmem:[%s1943_s2 + $0x90] sm:$0xff]  ;;  %v1092_v49 = vld [vmem:[%s1943_s2 + $0x98] sm:$0xff]  ;;  %v1093_v53 = vld [vmem:[%s1943_s2 + $0xa0] sm:$0xff]  ;;  %s305_s9 = scalar_lea.vmem %s1949_s8, %s1139_s19 }
  0x10   : > { %v1687_v12 = vld [vmem:[%s300_s24] sm:$0xff]  ;;  %v1689_v13 = vld [vmem:[%s300_s24 + $0x8] sm:$0xff]  ;;  %1471 = vmatpush3.bf16.msra.mxu1 %v1468_v22  ;;  %v1452_v51 = vpack.c.bf16 %v1092_v49, %v1091_v48  ;;  %v1095_v56 = vld [vmem:[%s1943_s2 + $0xb0] sm:$0xff] }
  0x11   : > { %312 = vst.msk [vmem:[#allocation2 + $0x1] sm:$0xff] %vm311_vm1, %v1687_v12  ;;  %313 = vst.msk [vmem:[#allocation2 + $0x9] sm:$0xff] %vm311_vm1, %v1689_v13  ;;  %1427 = vmatpush3.bf16.msra.mxu0 %v1424_v9  ;;  %1473 = vmatprep.subr.bf16.mxu1 %v1472_v29  ;;  %v1094_v54 = vld [vmem:[%s1943_s2 + $0xa8] sm:$0xff]  ;;  %v1096_v57 = vld [vmem:[%s1943_s2 + $0xb8] sm:$0xff] }
  0x12   : > { %1429 = vmatprep.subr.bf16.mxu0 %v1428_v15  ;;  %v1456_v55 = vpack.c.bf16 %v1094_v54, %v1093_v53  ;;  %v1460_v58 = vpack.c.bf16 %v1096_v57, %v1095_v56  ;;  %v1110_v60 = vld [vmem:[%s1945_s4 + $0xd0] sm:$0xff]  ;;  %v1111_v61 = vld [vmem:[%s1945_s4 + $0xd8] sm:$0xff]  ;;  %v1112_v63 = vld [vmem:[%s1945_s4 + $0xe0] sm:$0xff] }
  0x13   : > { %v1484_v62 = vpack.c.bf16 %v1111_v61, %v1110_v60  ;;  %v1113_v0 = vld [vmem:[%s1945_s4 + $0xe8] sm:$0xff]  ;;  %v1114_v2 = vld [vmem:[%s1945_s4 + $0xf0] sm:$0xff]  ;;  %v1115_v3 = vld [vmem:[%s1945_s4 + $0xf8] sm:$0xff] }
  0x14   : > { %1475 = vmatpush3.bf16.msra.mxu1 %v1472_v29  ;;  %v1488_v1 = vpack.c.bf16 %v1113_v0, %v1112_v63  ;;  %v1492_v4 = vpack.c.bf16 %v1115_v3, %v1114_v2  ;;  %v618_v5 = vld [vmem:[%s1945_s4] sm:$0xff]  ;;  %v619_v6 = vld [vmem:[%s1945_s4 + $0x8] sm:$0xff]  ;;  %v318_v11 = vld [vmem:[%s1942_s1 + $0x10] sm:$0xff] }
  0x15   : > { %1431 = vmatpush3.bf16.msra.mxu0 %v1428_v15  ;;  %1477 = vmatprep.subr.bf16.mxu1 %v1476_v37  ;;  %v1496_v7 = vpack.c.bf16 %v619_v6, %v618_v5  ;;  %v316_v8 = vld [vmem:[%s1942_s1] sm:$0xff]  ;;  %v317_v9 = vld [vmem:[%s1942_s1 + $0x8] sm:$0xff]  ;;  %v322_v18 = vld [vmem:[%s1942_s1 + $0x30] sm:$0xff] }
  0x16   : > { %1433 = vmatprep.subr.bf16.mxu0 %v1432_v25  ;;  %v1560_v10 = vpack.c.bf16 %v317_v9, %v316_v8  ;;  %v320_v15 = vld [vmem:[%s1942_s1 + $0x20] sm:$0xff]  ;;  %v321_v16 = vld [vmem:[%s1942_s1 + $0x28] sm:$0xff]  ;;  %v323_v19 = vld [vmem:[%s1942_s1 + $0x38] sm:$0xff] }
  0x17   : > { %v1568_v17 = vpack.c.bf16 %v321_v16, %v320_v15  ;;  %v1572_v20 = vpack.c.bf16 %v323_v19, %v322_v18  ;;  %v1099_v21 = vld [vmem:[%s1944_s3] ss:$0 sm:$0xff]  ;;  %v621_v27 = vld [vmem:[%s1945_s4 + $0x18] sm:$0xff]  ;;  %v623_v31 = vld [vmem:[%s1945_s4 + $0x28] sm:$0xff] }
  0x18   : > { %v334_v26 = vld [vmem:[#allocation2 + $0x1] sm:$0xff]  ;;  %v335_v32 = vld [vmem:[#allocation2 + $0x9] sm:$0xff]  ;;  %1479 = vmatpush3.bf16.msra.mxu1 %v1476_v37  ;;  %v629_v41 = vld [vmem:[%s1945_s4 + $0x58] sm:$0xff] }
  0x19   : > { %1251 = vmatprep.mubr.msk.f32.mxu0 %vm311_vm1, %v334_v26  ;;  %v324_v34 = vld [vmem:[#allocation2] sm:$0xff]  ;;  %1481 = vmatprep.subr.bf16.mxu1 %v1480_v43  ;;  %v325_v50 = vld [vmem:[#allocation2 + $0x8] sm:$0xff]  ;;  %v620_v26 = vld [vmem:[%s1945_s4 + $0x10] sm:$0xff] }
  0x1a   : > { %1252 = vmatmul.mubr.msk.f32.vlgmr.msra.gmra.mrb[0].mxu0 %vm311_vm1, %v335_v32  ;;  %v507_v52 = vld [vmem:[#allocation2 + $0x2] sm:$0xff]  ;;  %v508_v59 = vld [vmem:[#allocation2 + $0xa] sm:$0xff]  ;;  %v1119_v53 = vld [vmem:[%s1945_s4 + $0x118] sm:$0xff] }
  0x1b   : > { %1435 = vmatpush3.bf16.msra.mxu0 %v1432_v25  ;;  %1270 = vmatprep.mubr.msk.f32.mxu0 %vm311_vm1, %v324_v34  ;;  %v622_v30 = vld [vmem:[%s1945_s4 + $0x20] sm:$0xff]  ;;  %v625_v34 = vld [vmem:[%s1945_s4 + $0x38] sm:$0xff]  ;;  %v627_v38 = vld [vmem:[%s1945_s4 + $0x48] sm:$0xff] }
  0x1c   : > { %1437 = vmatprep.subr.bf16.mxu0 %v1436_v33  ;;  %1483 = vmatpush3.bf16.msra.mxu1 %v1480_v43  ;;  %v1504_v32 = vpack.c.bf16 %v623_v31, %v622_v30  ;;  %v626_v37 = vld [vmem:[%s1945_s4 + $0x40] sm:$0xff]  ;;  %v632_v46 = vld [vmem:[%s1945_s4 + $0x70] sm:$0xff]  ;;  %v1121_v57 = vld [vmem:[%s1945_s4 + $0x128] sm:$0xff] }
  0x1d   : > { %1485 = vmatprep.subr.bf16.mxu1 %v1484_v62  ;;  %v1512_v39 = vpack.c.bf16 %v627_v38, %v626_v37  ;;  %v630_v43 = vld [vmem:[%s1945_s4 + $0x60] sm:$0xff]  ;;  %v1122_v60 = vld [vmem:[%s1945_s4 + $0x130] sm:$0xff]  ;;  %v1123_v61 = vld [vmem:[%s1945_s4 + $0x138] sm:$0xff] }
  0x1e   : > { %v1116_v49 = vld [vmem:[%s1945_s4 + $0x100] sm:$0xff]  ;;  %v1125_v0 = vld [vmem:[%s1945_s4 + $0x148] sm:$0xff]  ;;  %v1126_v2 = vld [vmem:[%s1945_s4 + $0x150] sm:$0xff] }
  0x1f   : > { %1439 = vmatpush3.bf16.msra.mxu0 %v1436_v33  ;;  %v624_v33 = vld [vmem:[%s1945_s4 + $0x30] sm:$0xff]  ;;  %v1120_v56 = vld [vmem:[%s1945_s4 + $0x120] sm:$0xff]  ;;  %v1127_v3 = vld [vmem:[%s1945_s4 + $0x158] sm:$0xff] }
  0x20   : > { %1441 = vmatprep.subr.bf16.mxu0 %v1440_v40  ;;  %1487 = vmatpush3.bf16.msra.mxu1 %v1484_v62  ;;  %v1508_v36 = vpack.c.bf16 %v625_v34, %v624_v33  ;;  %v1540_v62 = vpack.c.bf16 %v1123_v61, %v1122_v60  ;;  %v1124_v63 = vld [vmem:[%s1945_s4 + $0x140] sm:$0xff]  ;;  %v1129_v6 = vld [vmem:[%s1945_s4 + $0x168] sm:$0xff]  ;;  %v1130_v8 = vld [vmem:[%s1945_s4 + $0x170] sm:$0xff] }
  0x21   : > { %1489 = vmatprep.subr.bf16.mxu1 %v1488_v1  ;;  %v1128_v5 = vld [vmem:[%s1945_s4 + $0x160] sm:$0xff]  ;;  %v1131_v9 = vld [vmem:[%s1945_s4 + $0x178] sm:$0xff] }
  0x22   : > { %v1132_v15 = vld [vmem:[%s1946_s5] ss:$0 sm:$0xff] }
  0x23   : > { %1443 = vmatpush3.bf16.msra.mxu0 %v1440_v40  ;;  %v628_v40 = vld [vmem:[%s1945_s4 + $0x50] sm:$0xff] }
  0x24   : > { %1445 = vmatprep.subr.bf16.mxu0 %v1444_v44  ;;  %1491 = vmatpush3.bf16.msra.mxu1 %v1488_v1  ;;  %v1516_v42 = vpack.c.bf16 %v629_v41, %v628_v40  ;;  %v1544_v1 = vpack.c.bf16 %v1125_v0, %v1124_v63 }
  0x25   : > { %1493 = vmatprep.subr.bf16.mxu1 %v1492_v4 }
  0x27   : > { %1447 = vmatpush3.bf16.msra.mxu0 %v1444_v44  ;;  %v631_v44 = vld [vmem:[%s1945_s4 + $0x68] sm:$0xff] }
  0x28   : > { %1449 = vmatprep.subr.bf16.mxu0 %v1448_v47  ;;  %1495 = vmatpush3.bf16.msra.mxu1 %v1492_v4  ;;  %v1520_v45 = vpack.c.bf16 %v631_v44, %v630_v43  ;;  %v1548_v4 = vpack.c.bf16 %v1127_v3, %v1126_v2 }
  0x29   : > { %1497 = vmatprep.subr.bf16.mxu1 %v1496_v7 }
  0x2a   : > { %1271 = vmatmul.mubr.msk.f32.vlgmr.msra.gmra.mrb[0].mxu0 %vm311_vm1, %v325_v50  ;;  %v1117_v50 = vld [vmem:[%s1945_s4 + $0x108] sm:$0xff] }
  0x2b   : > { %1451 = vmatpush3.bf16.msra.mxu0 %v1448_v47  ;;  %1289 = vmatprep.mubr.msk.f32.mxu0 %vm311_vm1, %v507_v52  ;;  %v633_v47 = vld [vmem:[%s1945_s4 + $0x78] sm:$0xff]  ;;  %v1118_v52 = vld [vmem:[%s1945_s4 + $0x110] sm:$0xff] }
  0x2c   : > { %1453 = vmatprep.subr.bf16.mxu0 %v1452_v51  ;;  %v1524_v48 = vpack.c.bf16 %v633_v47, %v632_v46  ;;  %v1532_v54 = vpack.c.bf16 %v1119_v53, %v1118_v52 }
  0x2f   : > { %1455 = vmatpush3.bf16.msra.mxu0 %v1452_v51  ;;  %v1528_v51 = vpack.c.bf16 %v1117_v50, %v1116_v49 }
  0x30   : > { %1457 = vmatprep.subr.bf16.mxu0 %v1456_v55 }
  0x33   : > { %1459 = vmatpush3.bf16.msra.mxu0 %v1456_v55 }
  0x34   : > { %1461 = vmatprep.subr.bf16.mxu0 %v1460_v58 }
  0x37   : > { %1463 = vmatpush3.bf16.msra.mxu0 %v1460_v58 }
  0x38   : > { %1561 = vmatprep.subr.bf16.mxu0 %v1560_v10 }
  0x3a   : > { %1290 = vmatmul.mubr.msk.f32.vlgmr.msra.gmra.mrb[0].mxu0 %vm311_vm1, %v508_v59  ;;  %v1536_v59 = vpack.c.bf16 %v1121_v57, %v1120_v56 }
  0x3b   : > { %1413 = vmatprep.mubr.msk.f32.mxu0 %vm311_vm1, %v1687_v12  ;;  %1563 = vmatpush3.bf16.msra.mxu0 %v1560_v10  ;;  %v319_v12 = vld [vmem:[%s1942_s1 + $0x18] sm:$0xff]  ;;  %v1556_v10 = vpack.c.bf16 %v1131_v9, %v1130_v8 }
  0x3c   : > { %v1564_v14 = vpack.c.bf16 %v319_v12, %v318_v11 }
  0x3e   : > { %1565 = vmatprep.subr.bf16.mxu0 %v1564_v14 }
  0x3f   : > { %1567 = vmatpush3.bf16.msra.mxu0 %v1564_v14 }
  0x40   : > { %1569 = vmatprep.subr.bf16.mxu0 %v1568_v17 }
  0x43   : > { %1571 = vmatpush3.bf16.msra.mxu0 %v1568_v17 }
  0x44   : > { %1573 = vmatprep.subr.bf16.mxu0 %v1572_v20 }
  0x47   : > { %1575 = vmatpush3.bf16.msra.mxu0 %v1572_v20  ;;  %v1133_v20 = vld [vmem:[%s1947_s6] ss:$0 sm:$0xff] }
  0x4a   : > { %1414 = vmatmul.mubr.msk.f32.vlgmr.msra.gmra.mrb[2].mxu0 %vm311_vm1, %v1689_v13  ;;  %v1500_v13 = vpack.c.bf16 %v621_v27, %v620_v26 }
 0x10d   : > { %v1291_v22 = vpop.f32.mrb[0].mxu0 }
 0x10e   : > { %v609_v23 = vadd.f32 %v1291_v22, %v1099_v21  ;;  %v590_v24 = vpop.f32.mrb[1].mxu0 }
 0x10f   : > { %v608_v25 = vadd.f32 %v1099_v21, %v590_v24  ;;  %v1136_v24 = vld [vmem:[%s1948_s7] ss:$0 sm:$0xff] }
 0x110   : > { %v611_v28 = vmax.f32 %v609_v23, 0.0 }
 0x111   : > { %v610_v29 = vmax.f32 %v608_v25, 0.0 }
 0x112   : > { %615 = vst [vmem:[#allocation3 + $0x9] sm:$0xff] %v611_v28 }
 0x113   : > { %614 = vst [vmem:[#allocation3 + $0x1] sm:$0xff] %v610_v29  ;;  %1324 = vmatprep.mubr.f32.mxu1 %v610_v29 }
 0x114   : > { %1325 = vmatmul.mubr.f32.vlgmr.msra.gmra.mrb[0].mxu1 %v611_v28 }
 0x115   : > { %1499 = vmatpush3.bf16.msra.mxu1 %v1496_v7  ;;  %v1552_v7 = vpack.c.bf16 %v1129_v6, %v1128_v5 }
 0x116   : > { %1501 = vmatprep.subr.bf16.mxu1 %v1500_v13 }
 0x119   : > { %1503 = vmatpush3.bf16.msra.mxu1 %v1500_v13  ;;  %v804_v11 = vld [vmem:[#allocation3 + $0xa] sm:$0xff] }
 0x11a   : > { %v616_v35 = vld [vmem:[#allocation3] sm:$0xff]  ;;  %1505 = vmatprep.subr.bf16.mxu1 %v1504_v32  ;;  %v617_v55 = vld [vmem:[#allocation3 + $0x8] sm:$0xff] }
 0x11b   : > { %1359 = vmatprep.mubr.f32.mxu1 %v616_v35  ;;  %v803_v58 = vld [vmem:[#allocation3 + $0x2] sm:$0xff] }
 0x11d   : > { %1507 = vmatpush3.bf16.msra.mxu1 %v1504_v32  ;;  %v1415_v12 = vpop.f32.mrb[2].mxu0 }
 0x11e   : > { %1509 = vmatprep.subr.bf16.mxu1 %v1508_v36  ;;  %v991_v14 = vpop.f32.mrb[3].mxu0 }
 0x121   : > { %1511 = vmatpush3.bf16.msra.mxu1 %v1508_v36 }
 0x122   : > { %1513 = vmatprep.subr.bf16.mxu1 %v1512_v39 }
 0x125   : > { %1515 = vmatpush3.bf16.msra.mxu1 %v1512_v39 }
 0x126   : > { %1517 = vmatprep.subr.bf16.mxu1 %v1516_v42 }
 0x129   : > { %1519 = vmatpush3.bf16.msra.mxu1 %v1516_v42 }
 0x12a   : > { %1521 = vmatprep.subr.bf16.mxu1 %v1520_v45 }
 0x12d   : > { %1523 = vmatpush3.bf16.msra.mxu1 %v1520_v45 }
 0x12e   : > { %1525 = vmatprep.subr.bf16.mxu1 %v1524_v48 }
 0x131   : > { %1527 = vmatpush3.bf16.msra.mxu1 %v1524_v48 }
 0x132   : > { %1529 = vmatprep.subr.bf16.mxu1 %v1528_v51 }
 0x134   : > { %1360 = vmatmul.mubr.f32.vlgmr.msra.gmra.mrb[0].mxu1 %v617_v55 }
 0x135   : > { %1531 = vmatpush3.bf16.msra.mxu1 %v1528_v51  ;;  %1394 = vmatprep.mubr.f32.mxu1 %v803_v58 }
 0x136   : > { %1533 = vmatprep.subr.bf16.mxu1 %v1532_v54 }
 0x139   : > { %1535 = vmatpush3.bf16.msra.mxu1 %v1532_v54 }
 0x13a   : > { %1537 = vmatprep.subr.bf16.mxu1 %v1536_v59 }
 0x13d   : > { %1539 = vmatpush3.bf16.msra.mxu1 %v1536_v59 }
 0x13e   : > { %1541 = vmatprep.subr.bf16.mxu1 %v1540_v62 }
 0x141   : > { %1543 = vmatpush3.bf16.msra.mxu1 %v1540_v62 }
 0x142   : > { %1545 = vmatprep.subr.bf16.mxu1 %v1544_v1 }
 0x145   : > { %1547 = vmatpush3.bf16.msra.mxu1 %v1544_v1 }
 0x146   : > { %1549 = vmatprep.subr.bf16.mxu1 %v1548_v4 }
 0x149   : > { %1551 = vmatpush3.bf16.msra.mxu1 %v1548_v4 }
 0x14a   : > { %1553 = vmatprep.subr.bf16.mxu1 %v1552_v7 }
 0x14d   : > { %1555 = vmatpush3.bf16.msra.mxu1 %v1552_v7 }
 0x14e   : > { %1557 = vmatprep.subr.bf16.mxu1 %v1556_v10 }
 0x151   : > { %1559 = vmatpush3.bf16.msra.mxu1 %v1556_v10 }
 0x154   : > { %1395 = vmatmul.mubr.f32.vlgmr.msra.gmra.mrb[0].mxu1 %v804_v11 }
 0x227   : > { %v1396_v16 = vpop.f32.mrb[0].mxu1 }
 0x228   : > { %v907_v17 = vadd.f32 %v1396_v16, %v1132_v15  ;;  %v888_v18 = vpop.f32.mrb[1].mxu1 }
 0x229   : > { %v906_v19 = vadd.f32 %v1132_v15, %v888_v18 }
 0x22a   : > { %v909_v21 = vmax.f32 %v907_v17, 0.0 }
 0x22b   : > { %v908_v22 = vmax.f32 %v906_v19, 0.0 }
 0x22c   : > { %v918_v23 = vmul.f32 %v1133_v20, %v909_v21 }
 0x22d   : > { %v917_v25 = vmul.f32 %v1133_v20, %v908_v22 }
 0x22e   : > { %v997_v26 = vadd.f32 %v1415_v12, %v918_v23 }
 0x22f   : > { %v992_v27 = vadd.f32 %v991_v14, %v917_v25 }
 0x230   : > { %v1008_v28 = vadd.f32 %v1136_v24, %v997_v26 }
 0x231   : > { %v1007_v29 = vadd.f32 %v1136_v24, %v992_v27 }
 0x232   : > { %v1010_v13 = vmax.f32 %v1008_v28, 0.0 }
 0x233   : > { %v1009_v30 = vmax.f32 %v1007_v29, 0.0 }
 0x234   : > { %1012 = vst [vmem:[%s305_s9 + $0x8] sm:$0xff] %v1010_v13 }
 0x235   : > { %1011 = vst [vmem:[%s305_s9] sm:$0xff] %v1009_v30 }
 0x236 PF: > { %s18_s27 = sadd.s32 1, %s1599_s27  }
 0x237   : > { %p15_p4 = scmp.ge.s32.totalorder %s18_s27, 4  }
 0x239   :  { %17 = sbr.rel (!%p15_p4) target bundleno = 1 (0x1), region = 86 }

</bundles_post_ra>
